<compile_context>
chip_gen: v5e
topology: v5e:2x2
jax: 0.10.0
libtpu: 0.0.40
codegen_flags: <defaults>
</compile_context>

<pallas_src>
from functools import partial

import jax
import jax.numpy as jnp
from jax.experimental import pallas as pl
from jax.experimental.pallas import tpu as pltpu


# ----------------------------------------------------------------------------
# Per-tile math
# ----------------------------------------------------------------------------
def _per_sample_loss(labels, logits, *, alpha, gamma):
    """Focal loss for one (TM, C) logits tile + (TM, 1) int labels -> (TM, 1) f32."""
    x = logits.astype(jnp.float32)                                    # (TM, C)
    c = x.shape[1]

    # Stable log-softmax pieces — single full-width exp pass.
    m = jnp.max(x, axis=1, keepdims=True)                             # (TM, 1)
    shifted = x - m                                                   # (TM, C)
    lse = jnp.log(jnp.sum(jnp.exp(shifted), axis=1, keepdims=True))   # (TM, 1)

    # Gather the target (shifted) logit via one-hot select; class-id iota is a
    # (1, C) row broadcast against the (TM, 1) labels (no (TM,C) iota per step).
    col = jax.lax.broadcasted_iota(jnp.int32, (1, c), 1)              # (1, C)
    onehot = col == labels                                            # (TM, C)
    g = jnp.sum(jnp.where(onehot, shifted, 0.0), axis=1, keepdims=True)

    log_p_t = g - lse                                                 # (TM, 1)
    p_t = jnp.exp(log_p_t)                                            # column exp only
    one_minus = 1.0 - p_t

    if float(gamma) == int(gamma) and gamma >= 0:
        focal = jnp.ones_like(one_minus)
        for _ in range(int(gamma)):                                   # gamma=2 -> t*t
            focal = focal * one_minus
    else:
        focal = one_minus ** gamma

    return (-alpha) * focal * log_p_t                                 # (TM, 1)


# ----------------------------------------------------------------------------
# Kernels
# ----------------------------------------------------------------------------
def _focal_partial_sum_kernel(labels_ref, logits_ref, out_ref, *,
                              alpha, gamma, n_total, block_m):
    """mean/sum: one (8,128) partial-sum block per grid step ('parallel' axis)."""
    i = pl.program_id(0)
    loss = _per_sample_loss(labels_ref[...], logits_ref[...],
                            alpha=alpha, gamma=gamma)                 # (TM, 1)

    # Zero padded rows of a partial last tile BEFORE reducing (mask must stay
    # coupled with the wrapper's divide-by-global-N).
    row = i * block_m + jax.lax.broadcasted_iota(jnp.int32, (block_m, 1), 0)
    masked = jnp.where(row < n_total, loss, 0.0)
    tile_sum = jnp.sum(masked, axis=0, keepdims=True)                 # (1, 1)

    # Exactly one non-zero element per block so the wrapper can jnp.sum(out).
    sub = jax.lax.broadcasted_iota(jnp.int32, (8, 128), 0)
    lane = jax.lax.broadcasted_iota(jnp.int32, (8, 128), 1)
    out_ref[...] = jnp.where((sub == 0) & (lane == 0), tile_sum, 0.0)


def _focal_none_lane_kernel(labels_ref, logits_ref, out_ref, *, alpha, gamma, block_m):
    """'none', lane-dense: the (TM,1) loss column is transposed onto lanes in
    128-wide chunks via a masked sublane reduction, stored as an (8, TM//8) block."""
    loss = _per_sample_loss(labels_ref[...], logits_ref[...],
                            alpha=alpha, gamma=gamma)                 # (TM, 1)
    w = block_m // 8
    sub = jax.lax.broadcasted_iota(jnp.int32, (128, 128), 0)
    lane = jax.lax.broadcasted_iota(jnp.int32, (128, 128), 1)
    diag = sub == lane                                                # built once
    for s in range(8):
        for kk in range(w // 128):
            start = s * w + kk * 128
            chunk = loss[start:start + 128, :]                        # (128, 1)
            out_ref[s:s + 1, kk * 128:(kk + 1) * 128] = jnp.sum(
                jnp.where(diag, chunk, 0.0), axis=0, keepdims=True)   # (1, 128)


def _focal_none_col_kernel(labels_ref, logits_ref, out_ref, *, alpha, gamma):
    """'none' fallback (small N / odd tiles): per-sample loss column."""
    out_ref[...] = _per_sample_loss(labels_ref[...], logits_ref[...],
                                    alpha=alpha, gamma=gamma)


# ----------------------------------------------------------------------------
# Sizing helpers
# ----------------------------------------------------------------------------
def _vmem_capacity_bytes():
    try:
        cap = getattr(pltpu.get_tpu_info(), "vmem_capacity_bytes", None)
        if cap:
            return int(cap)
    except Exception:
        pass
    return 64 << 20          # conservative: v7x physical VMEM per TensorCore


def _pick_block_m(n, c, itemsize, *, target_tile_bytes, vmem_budget, max_rows=4096):
    """Row tile: native logits tile ~target bytes; capped so VMEM f32 temps and
    Mosaic per-vreg unrolling stay bounded; multiple of 8 unless == N."""
    tm = max(8, target_tile_bytes // max(1, c * itemsize))
    tm = int(min(tm, max_rows, n))
    # Per-row VMEM: double-buffered native logits + ~4 f32-wide temps + labels.
    per_row = c * (2 * itemsize + 4 * 4) + 2 * 4
    while tm > 8 and tm * per_row > vmem_budget:
        tm //= 2
    if tm >= n:
        return n
    return max(8, (tm // 8) * 8)


def _vmem_limit_bytes(block_m, c, itemsize, vmem_cap):
    est = block_m * (c * (2 * itemsize + 4 * 4) + 2 * 4) + (2 << 20)
    return int(min(vmem_cap * 7 // 8, max(32 << 20, 2 * est)))


# ----------------------------------------------------------------------------
# Wrapper
# ----------------------------------------------------------------------------
def softmax_focal_loss(y, y_pred, *, alpha=1.0, gamma=2.0, reduction="mean",
                       block_m=None):
    """y: (N,) int class labels, y_pred: (N, C) float logits."""
    n, c = y_pred.shape
    labels = y.reshape(n, 1).astype(jnp.int32)          # torch's y.view(-1, 1)
    itemsize = jnp.dtype(y_pred.dtype).itemsize

    vmem_cap = _vmem_capacity_bytes()
    if block_m is None:
        block_m = _pick_block_m(
            n, c, itemsize,
            target_tile_bytes=min(4 << 20, max(1 << 20, vmem_cap // 32)),
            vmem_budget=vmem_cap // 4)
    block_m = min(int(block_m), n)
    if block_m < n and block_m % 8 != 0:
        block_m = max(8, (block_m // 8) * 8)
    block_m = max(1, min(block_m, n))

    num_tiles = pl.cdiv(n, block_m)
    grid = (num_tiles,)
    in_specs = [
        pl.BlockSpec((block_m, 1), lambda i: (i, 0)),   # labels column (int32)
        pl.BlockSpec((block_m, c), lambda i: (i, 0)),   # logits tile (native dtype)
    ]
    cparams = pltpu.CompilerParams(
        dimension_semantics=("parallel",),
        vmem_limit_bytes=_vmem_limit_bytes(block_m, c, itemsize, vmem_cap))

    if reduction in ("mean", "sum"):
        kernel = partial(_focal_partial_sum_kernel, alpha=float(alpha),
                         gamma=float(gamma), n_total=n, block_m=block_m)
        partials = pl.pallas_call(
            kernel,
            out_shape=jax.ShapeDtypeStruct((num_tiles * 8, 128), jnp.float32),
            grid_spec=pltpu.PrefetchScalarGridSpec(
                num_scalar_prefetch=0, grid=grid, in_specs=in_specs,
                out_specs=pl.BlockSpec((8, 128), lambda i: (i, 0))),
            compiler_params=cparams,
        )(labels, y_pred)
        total = jnp.sum(partials)            # all non-[0,0] elements are exact 0
        return total / n if reduction == "mean" else total

    # reduction == 'none' (or anything else, matching torch's else branch)
    lane_block = (block_m // 1024) * 1024
    if lane_block >= 1024:
        bm = lane_block
        nt = pl.cdiv(n, bm)
        w = bm // 8
        kernel = partial(_focal_none_lane_kernel, alpha=float(alpha),
                         gamma=float(gamma), block_m=bm)
        out = pl.pallas_call(
            kernel,
            out_shape=jax.ShapeDtypeStruct((nt * 8, w), jnp.float32),
            grid_spec=pltpu.PrefetchScalarGridSpec(
                num_scalar_prefetch=0, grid=(nt,),
                in_specs=[pl.BlockSpec((bm, 1), lambda i: (i, 0)),
                          pl.BlockSpec((bm, c), lambda i: (i, 0))],
                out_specs=pl.BlockSpec((8, w), lambda i: (i, 0))),
            compiler_params=cparams,
        )(labels, y_pred)
        # (8, w) patch row s of tile i holds loss[i*bm + s*w : i*bm + (s+1)*w],
        # so a plain row-major flatten recovers original sample order.
        return out.reshape(-1)[:n]

    # Fallback: lane-sparse column output (small N / odd tile sizes).
    kernel = partial(_focal_none_col_kernel, alpha=float(alpha), gamma=float(gamma))
    out = pl.pallas_call(
        kernel,
        out_shape=jax.ShapeDtypeStruct((n, 1), jnp.float32),
        grid_spec=pltpu.PrefetchScalarGridSpec(
            num_scalar_prefetch=0, grid=grid, in_specs=in_specs,
            out_specs=pl.BlockSpec((block_m, 1), lambda i: (i, 0))),
        compiler_params=cparams,
    )(labels, y_pred)
    return out[:, 0]


# ----------------------------------------------------------------------------
# Pure-JAX reference
# ----------------------------------------------------------------------------
def _reference(y, y_pred, alpha=1.0, gamma=2.0, reduction="mean"):
    log_probs = jax.nn.log_softmax(y_pred.astype(jnp.float32), axis=1)
    probs = jnp.exp(log_probs)
    idx = y.astype(jnp.int32)
    log_p_t = jnp.take_along_axis(log_probs, idx[:, None], axis=1)[:, 0]
    p_t = jnp.take_along_axis(probs, idx[:, None], axis=1)[:, 0]
    loss = -alpha * (1.0 - p_t) ** gamma * log_p_t
    if reduction == "mean":
        return loss.mean()
    elif reduction == "sum":
        return loss.sum()
    return loss


if __name__ == "__main__":
    key = jax.random.PRNGKey(0)
    k1, k2, k3, k4, k5, k6 = jax.random.split(key, 6)

    # Primary small example: N=16 samples, C=8 classes, mean reduction.
    N, C = 16, 8
    y_pred = jax.random.normal(k1, (N, C), dtype=jnp.float32)   # logits
    y = jax.random.randint(k2, (N,), 0, C, dtype=jnp.int32)     # class labels

    out = jax.block_until_ready(
        softmax_focal_loss(y, y_pred, alpha=1.0, gamma=2.0, reduction="mean"))
    ref = _reference(y, y_pred, 1.0, 2.0, "mean")
    assert jnp.allclose(out, ref, atol=1e-5, rtol=1e-5), (out, ref)

    # Multi-tile partial-sum path (partial last tile, row masking) + column 'none'.
    N2, C2 = 20, 8
    y_pred2 = jax.random.normal(k3, (N2, C2), dtype=jnp.float32)
    y2 = jax.random.randint(k4, (N2,), 0, C2, dtype=jnp.int32)

    out_sum = jax.block_until_ready(
        softmax_focal_loss(y2, y_pred2, reduction="sum", block_m=8))
    ref_sum = _reference(y2, y_pred2, 1.0, 2.0, "sum")
    assert jnp.allclose(out_sum, ref_sum, atol=1e-4, rtol=1e-5), (out_sum, ref_sum)

    out_none = jax.block_until_ready(
        softmax_focal_loss(y2, y_pred2, reduction="none", block_m=8))
    ref_none = _reference(y2, y_pred2, 1.0, 2.0, "none")
    assert jnp.allclose(out_none, ref_none, atol=1e-5, rtol=1e-5)

    # Lane-dense 'none' path + default (byte-target) tiling: N >= 1024, 2 tiles,
    # partial last tile.  Also check 'mean' with default tiling on the same data.
    N3, C3 = 2100, 16
    y_pred3 = jax.random.normal(k5, (N3, C3), dtype=jnp.float32)
    y3 = jax.random.randint(k6, (N3,), 0, C3, dtype=jnp.int32)

    out_none3 = jax.block_until_ready(
        softmax_focal_loss(y3, y_pred3, reduction="none"))
    ref_none3 = _reference(y3, y_pred3, 1.0, 2.0, "none")
    assert out_none3.shape == ref_none3.shape
    assert jnp.allclose(out_none3, ref_none3, atol=1e-5, rtol=1e-5)

    out_mean3 = jax.block_until_ready(
        softmax_focal_loss(y3, y_pred3, reduction="mean"))
    ref_mean3 = _reference(y3, y_pred3, 1.0, 2.0, "mean")
    assert jnp.allclose(out_mean3, ref_mean3, atol=1e-4, rtol=1e-4), (out_mean3, ref_mean3)

    print("KERNEL_OK")
</pallas_src>

<mosaic_0001>
module attributes {stable_mosaic.version = 11 : i64} {
  func.func @_focal_partial_sum_kernel(%arg0: i32, %arg1: memref<16x1xi32, #tpu.memory_space<vmem>>, %arg2: memref<16x8xf32, #tpu.memory_space<vmem>>, %arg3: memref<8x128xf32, #tpu.memory_space<vmem>>) attributes {dimension_semantics = [#tpu.dimension_semantics<parallel>], iteration_bounds = array<i64: 1>, scalar_prefetch = 0 : i64, scratch_operands = 0 : i64, tpu.core_type = #tpu.core_type<tc>, window_params = [{transform_indices = @transform_0, window_bounds = array<i64: 16, 1>}, {transform_indices = @transform_1, window_bounds = array<i64: 16, 8>}, {transform_indices = @transform_2, window_bounds = array<i64: 8, 128>}]} {
    %c0 = arith.constant 0 : index
    %c0_0 = arith.constant 0 : index
    %0 = vector.load %arg1[%c0, %c0_0] : memref<16x1xi32, #tpu.memory_space<vmem>>, vector<16x1xi32>
    %c0_1 = arith.constant 0 : index
    %c0_2 = arith.constant 0 : index
    %1 = vector.load %arg2[%c0_1, %c0_2] : memref<16x8xf32, #tpu.memory_space<vmem>>, vector<16x8xf32>
    %cst = arith.constant dense<0xFF800000> : vector<16xf32>
    %2 = vector.multi_reduction <maximumf>, %1, %cst [1] : vector<16x8xf32> to vector<16xf32>
    %3 = vector.shape_cast %2 : vector<16xf32> to vector<16x1xf32>
    %4 = vector.broadcast %3 : vector<16x1xf32> to vector<16x8xf32>
    %5 = arith.subf %1, %4 : vector<16x8xf32>
    %6 = math.exp %5 : vector<16x8xf32>
    %cst_3 = arith.constant dense<0.000000e+00> : vector<16xf32>
    %7 = vector.multi_reduction <add>, %6, %cst_3 [1] : vector<16x8xf32> to vector<16xf32>
    %8 = vector.shape_cast %7 : vector<16xf32> to vector<16x1xf32>
    %9 = math.log %8 : vector<16x1xf32>
    %10 = tpu.iota {dimensions = array<i32: 1>} : vector<1x8xi32>
    %11 = vector.broadcast %10 : vector<1x8xi32> to vector<16x8xi32>
    %12 = vector.broadcast %0 : vector<16x1xi32> to vector<16x8xi32>
    %13 = arith.cmpi eq, %11, %12 : vector<16x8xi32>
    %cst_4 = arith.constant 0.000000e+00 : f32
    %14 = vector.broadcast %cst_4 : f32 to vector<16x8xf32>
    %15 = arith.select %13, %5, %14 : vector<16x8xi1>, vector<16x8xf32>
    %cst_5 = arith.constant dense<0.000000e+00> : vector<16xf32>
    %16 = vector.multi_reduction <add>, %15, %cst_5 [1] : vector<16x8xf32> to vector<16xf32>
    %17 = vector.shape_cast %16 : vector<16xf32> to vector<16x1xf32>
    %18 = arith.subf %17, %9 : vector<16x1xf32>
    %19 = math.exp %18 : vector<16x1xf32>
    %cst_6 = arith.constant 1.000000e+00 : f32
    %20 = vector.broadcast %cst_6 : f32 to vector<16x1xf32>
    %21 = arith.subf %20, %19 : vector<16x1xf32>
    %cst_7 = arith.constant 1.000000e+00 : f32
    %22 = vector.broadcast %cst_7 : f32 to vector<16x1xf32>
    %23 = arith.mulf %22, %21 : vector<16x1xf32>
    %24 = arith.mulf %23, %21 : vector<16x1xf32>
    %cst_8 = arith.constant -1.000000e+00 : f32
    %25 = vector.broadcast %cst_8 : f32 to vector<16x1xf32>
    %26 = arith.mulf %25, %24 : vector<16x1xf32>
    %27 = arith.mulf %26, %18 : vector<16x1xf32>
    %c16_i32 = arith.constant 16 : i32
    %28 = arith.muli %arg0, %c16_i32 : i32
    %29 = tpu.iota {dimensions = array<i32: 0>} : vector<16x1xi32>
    %30 = vector.broadcast %28 : i32 to vector<16x1xi32>
    %31 = arith.addi %30, %29 : vector<16x1xi32>
    %c16_i32_9 = arith.constant 16 : i32
    %32 = vector.broadcast %c16_i32_9 : i32 to vector<16x1xi32>
    %33 = arith.cmpi slt, %31, %32 : vector<16x1xi32>
    %cst_10 = arith.constant 0.000000e+00 : f32
    %34 = vector.broadcast %cst_10 : f32 to vector<16x1xf32>
    %35 = arith.select %33, %27, %34 : vector<16x1xi1>, vector<16x1xf32>
    %cst_11 = arith.constant dense<0.000000e+00> : vector<1xf32>
    %36 = vector.multi_reduction <add>, %35, %cst_11 [0] : vector<16x1xf32> to vector<1xf32>
    %37 = vector.shape_cast %36 : vector<1xf32> to vector<1x1xf32>
    %38 = tpu.iota {dimensions = array<i32: 0>} : vector<8x128xi32>
    %39 = tpu.iota {dimensions = array<i32: 1>} : vector<8x128xi32>
    %c0_i32 = arith.constant 0 : i32
    %40 = vector.broadcast %c0_i32 : i32 to vector<8x128xi32>
    %41 = arith.cmpi eq, %38, %40 : vector<8x128xi32>
    %c0_i32_12 = arith.constant 0 : i32
    %42 = vector.broadcast %c0_i32_12 : i32 to vector<8x128xi32>
    %43 = arith.cmpi eq, %39, %42 : vector<8x128xi32>
    %44 = arith.andi %41, %43 : vector<8x128xi1>
    %cst_13 = arith.constant 0.000000e+00 : f32
    %45 = vector.shape_cast %37 : vector<1x1xf32> to vector<1x1xf32>
    %46 = vector.broadcast %45 : vector<1x1xf32> to vector<8x128xf32>
    %47 = vector.broadcast %cst_13 : f32 to vector<8x128xf32>
    %48 = arith.select %44, %46, %47 : vector<8x128xi1>, vector<8x128xf32>
    %c0_14 = arith.constant 0 : index
    %c0_15 = arith.constant 0 : index
    %49 = vector.load %arg3[%c0_14, %c0_15] : memref<8x128xf32, #tpu.memory_space<vmem>>, vector<8x128xf32>
    tpu.vector_store %arg3[%c0_14, %c0_15], %48 {strides = array<i32>} : memref<8x128xf32, #tpu.memory_space<vmem>>, vector<8x128xf32>,
    return
  }
  func.func @transform_0(%arg0: i32) -> (i32, i32) {
    %c0_i32 = arith.constant 0 : i32
    %c0_i32_0 = arith.constant 0 : i32
    return %arg0, %c0_i32 : i32, i32
  }
  func.func @transform_1(%arg0: i32) -> (i32, i32) {
    %c0_i32 = arith.constant 0 : i32
    %c0_i32_0 = arith.constant 0 : i32
    return %arg0, %c0_i32 : i32, i32
  }
  func.func @transform_2(%arg0: i32) -> (i32, i32) {
    %c0_i32 = arith.constant 0 : i32
    %c0_i32_0 = arith.constant 0 : i32
    return %arg0, %c0_i32 : i32, i32
  }
}

</mosaic_0001>

<bundles_post_ra>
// kernel: tpu_custom_call.1
= control target key start
LH: loop header
LB: loop body
LE: loop exit
PB: predicated region body
PF: predicated region fallthrough
CT: control target
= control target key end

     0   :  { %vm16_vm0 = vcmask 64512   ;;  %v152_v3 = vmov 0   ;;  %s195_s0 = inlined_call_operand.vmem [shape: s32[16,1], index: 0, kind: input, shape index: {}]   ;;  %s196_s1 = inlined_call_operand.vmem [shape: f32[16,8], index: 1, kind: input, shape index: {}]   ;;  %s197_s2 = inlined_call_operand.hbm [shape: f32[8,128], index: 2, kind: output, shape index: {}]  }
   0x1   :  { %v14_v0 = vld [vmem:[%s196_s1] sm:$0xff]  ;;  %112 = vset.pattern.permute.xlu1 %v152_v3  ;;  %113 = vset.pattern.permute.xlu0 %v152_v3 }
   0x2   :  { %v12_v1 = vld [vmem:[%s195_s0] sm:$0xff]  ;;  %v17_v2 = vsel %vm16_vm0, %v14_v0, -inf }
   0x3   :  { %7 = vsyncpa [#allocation3], 0  ;;  %18 = vmax.xlane.f32.xlu0 %v17_v2  ;;  %42 = vperm.xlu1 %112, %v12_v1   ;;  %v15_v4 = vld [vmem:[%s196_s1 + $0x8] sm:$0xff]  ;;  %v39_v7 = vlaneseq  ;;  %s101_s19 = sshll.u32 %s197_s2, 4  ;;  %s102_s19 = int_to_ptr.hbm [resolvable:$true] %s101_s19 }
   0x4   :  { %v20_v5 = vsel %vm16_vm0, %v15_v4, -inf  ;;  %v13_v6 = vld [vmem:[%s195_s0 + $0x8] sm:$0xff]  ;;  %s153_s0 = smov [#allocation2]  }
   0x5   :  { %v183_v8 = vand.u32 127, %v39_v7  ;;  %v73_v50 = vshrl.u32 %v39_v7, 7  ;;  %s99_s1 = sshll.u32 %s153_s0, 4  ;;  %s100_s1 = int_to_ptr.vmem [resolvable:$true] %s99_s1 }
   0x7   :  { %vm89_vm3 = vcmp.eq.s32.totalorder %v73_v50, 0  ;;  %vm90_vm4 = vcmp.eq.s32.totalorder %v183_v8, 0 }
   0x8   :  { %vm91_vm5 = vmand %vm89_vm3, %vm90_vm4 }
   0xb   :  { %21 = vmax.xlane.f32.xlu0 %v20_v5  ;;  %45 = vperm.xlu1 %112, %v13_v6  }
  0x75   :  { %v43_v9 = vpop.permute.xlu1 %42 }
  0x76   :  { %v19_v10 = vpop.xlane.xlu0 %18  ;;  %vm47_vm1 = vcmp.eq.s32.totalorder %v183_v8, %v43_v9 }
  0x77   :  { %v23_v11 = vsub.f32 %v14_v0, %v19_v10 }
  0x79   :  { %v25_v12 = vmul.f32 1.442695, %v23_v11  ;;  %v49_v13 = vsel %vm47_vm1, %v23_v11, 0.0 }
  0x7a   :  { %v51_v14 = vsel %vm16_vm0, %v49_v13, 0.0 }
  0x7b   :  { %114 = vpow2.f32 %v25_v12  ;;  %52 = vadd.xlane.f32.xlu0 %v51_v14 }
  0x7d   :  { %v46_v15 = vpop.permute.xlu1 %45 }
  0x7e   :  { %v22_v16 = vpop.xlane.xlu0 %21  ;;  %vm48_vm2 = vcmp.eq.s32.totalorder %v183_v8, %v46_v15 }
  0x7f   :  { %v24_v17 = vsub.f32 %v15_v4, %v22_v16 }
  0x81   :  { %v115_v18 = vpop.eup %114  ;;  %v27_v19 = vmul.f32 1.442695, %v24_v17  ;;  %v50_v20 = vsel %vm48_vm2, %v24_v17, 0.0 }
  0x82   :  { %v29_v21 = vsel %vm16_vm0, %v115_v18, 0.0  ;;  %v54_v22 = vsel %vm16_vm0, %v50_v20, 0.0 }
  0x83   :  { %116 = vpow2.f32 %v27_v19  ;;  %30 = vadd.xlane.f32.xlu2 %v29_v21  ;;  %55 = vadd.xlane.f32.xlu1 %v54_v22 }
  0x89   :  { %v117_v23 = vpop.eup %116 }
  0x8a   :  { %v32_v24 = vsel %vm16_vm0, %v117_v23, 0.0 }
  0x8b   :  { %33 = vadd.xlane.f32.xlu2 %v32_v24 }
  0xee   :  { %v53_v29 = vpop.xlane.xlu0 %52 }
  0xf6   :  { %v31_v25 = vpop.xlane.xlu2 %30  ;;  %v56_v34 = vpop.xlane.xlu1 %55 }
  0xf7   :  { %118 = vlog2.f32 %v31_v25 }
  0xfd   :  { %v119_v26 = vpop.eup %118 }
  0xfe   :  { %v36_v27 = vmul.f32 0.6931472, %v119_v26  ;;  %v34_v28 = vpop.xlane.xlu2 %33 }
  0xff   :  { %120 = vlog2.f32 %v34_v28 }
 0x100   :  { %v57_v30 = vsub.f32 %v53_v29, %v36_v27 }
 0x102   :  { %v59_v31 = vmul.f32 1.442695, %v57_v30 }
 0x104   :  { %122 = vpow2.f32 %v59_v31 }
 0x105   :  { %v121_v32 = vpop.eup %120 }
 0x106   :  { %v38_v33 = vmul.f32 0.6931472, %v121_v32 }
 0x108   :  { %v58_v35 = vsub.f32 %v56_v34, %v38_v33 }
 0x10a   :  { %v123_v36 = vpop.eup %122  ;;  %v61_v37 = vmul.f32 1.442695, %v58_v35 }
 0x10b   :  { %v63_v38 = vsub.f32 1.0, %v123_v36 }
 0x10c   :  { %124 = vpow2.f32 %v61_v37 }
 0x10d   :  { %v65_v39 = vmul.f32 %v63_v38, %v63_v38 }
 0x10f   :  { %v67_v42 = vmul.f32 -1.0, %v65_v39 }
 0x111   :  { %v69_v45 = vmul.f32 %v67_v42, %v57_v30 }
 0x112   :  { %v125_v40 = vpop.eup %124 }
 0x113   :  { %v64_v41 = vsub.f32 1.0, %v125_v40 }
 0x115   :  { %v66_v43 = vmul.f32 %v64_v41, %v64_v41 }
 0x117   :  { %v68_v44 = vmul.f32 -1.0, %v66_v43 }
 0x119   :  { %v70_v46 = vmul.f32 %v68_v44, %v58_v35 }
 0x11b   :  { %v82_v47 = vadd.f32 %v70_v46, %v69_v45 }
 0x11d   :  { %v83_v48 = vrot.slane %v82_v47, 4 }
 0x11f   :  { %v84_v49 = vadd.f32 %v83_v48, %v82_v47 }
 0x121   :  { %v85_v51 = vrot.slane %v84_v49, 2 }
 0x123   :  { %v86_v52 = vadd.f32 %v85_v51, %v84_v49 }
 0x125   :  { %v87_v53 = vrot.slane %v86_v52, 1 }
 0x127   :  { %v88_v54 = vadd.f32 %v87_v53, %v86_v52 }
 0x129   :  { %v92_v55 = vsel %vm91_vm5, %v88_v54, 0.0 }
 0x12a   :  { %93 = vst [vmem:[#allocation2] sm:$0xff] %v92_v55 }
 0x12b   :  { %104 = dma.vmem_to_hbm [thread:$0]  %s100_s1, 128, %s102_s19, [#allocation3]  }
 0x12c   :  { %150 = dma.done.wait [#allocation3], 128  }
 0x12d   :  { %151 = vsyncadd [#allocation3], 4294967168 }
 0x12e   :  { %109 = vsyncpa [#allocation3], 1 }

</bundles_post_ra>
